<compile_context>
chip_gen: v7x
topology: tpu7x:2x2x1
jax: 0.10.0
libtpu: 0.0.40
codegen_flags: <defaults>
</compile_context>

<pallas_src>
import jax
import jax.numpy as jnp
from jax.experimental import pallas as pl
from jax.experimental.pallas import tpu as pltpu
import numpy as np


NEG_SLOPE = 0.01   # F.leaky_relu default negative_slope
LANES = 128        # lane width of the output slab
TM_MAX = 1024      # max batch rows per grid step


def _leaky_relu(x):
    return jnp.where(x > 0, x, NEG_SLOPE * x)


def _round_up(n, m):
    return ((n + m - 1) // m) * m


# ----------------------------------------------------------------------------
# Kernel: one batch tile (TM, S) -> (TM, 128) slab [mean | log_std | value | 0]
# ----------------------------------------------------------------------------
def ppo_fused_kernel(
    x_ref,                    # (TM, S)          f32   (cast to bf16 in-kernel)
    w1_ref, b1_ref,           # (S, H0)   bf16,  (1, H0)   f32
    w2_ref, b2_ref,           # (H0, H1)  bf16,  (1, H1)   f32
    wh_ref, bh_ref,           # (H1, 128) bf16,  (1, 128)  f32  (zero-padded heads)
    out_ref,                  # (TM, 128)        f32
):
    x = x_ref[...].astype(jnp.bfloat16)

    # input layer + leaky_relu (f32 accumulate, f32 elementwise)
    h = jnp.dot(x, w1_ref[...], preferred_element_type=jnp.float32) + b1_ref[...]
    h = _leaky_relu(h).astype(jnp.bfloat16)

    # hidden layer + leaky_relu
    h = jnp.dot(h, w2_ref[...], preferred_element_type=jnp.float32) + b2_ref[...]
    h = _leaky_relu(h).astype(jnp.bfloat16)

    # fused output heads: one MXU push, one unmasked lane-dense store
    out_ref[...] = (
        jnp.dot(h, wh_ref[...], preferred_element_type=jnp.float32) + bh_ref[...]
    )


# ----------------------------------------------------------------------------
# Parameter init (mirrors the PyTorch module's shapes / init quirks)
# ----------------------------------------------------------------------------
def init_ppo_params(key, state_size, action_size, hidden_dims=(256, 256)):
    """Weights stored as (in_features, out_features).  Mimics hidden_init's
    lim = 1/sqrt(out_features) quirk (fan_in = weight.size()[0] in PyTorch's
    (out,in) layout) and PyTorch's default bias init."""
    ks = jax.random.split(key, 10)

    def lin(kw, kb, fan_in, fan_out, lim):
        w = jax.random.uniform(kw, (fan_in, fan_out), jnp.float32, -lim, lim)
        b_lim = 1.0 / np.sqrt(fan_in)
        b = jax.random.uniform(kb, (1, fan_out), jnp.float32, -b_lim, b_lim)
        return w, b

    h0, h1 = hidden_dims
    w1, b1 = lin(ks[0], ks[1], state_size, h0, 1.0 / np.sqrt(h0))
    w2, b2 = lin(ks[2], ks[3], h0, h1, 1.0 / np.sqrt(h1))
    wm, bm = lin(ks[4], ks[5], h1, action_size, 1.0 / np.sqrt(action_size))
    # output_layer_log_std keeps PyTorch's default init (lim = 1/sqrt(fan_in))
    wls, bls = lin(ks[6], ks[7], h1, action_size, 1.0 / np.sqrt(h1))
    wv, bv = lin(ks[8], ks[9], h1, 1, 1.0)
    return dict(w1=w1, b1=b1, w2=w2, b2=b2, wm=wm, bm=bm,
                wls=wls, bls=bls, wv=wv, bv=bv)


def prepare_ppo_params(params):
    """One-time prep (hoisted out of the per-step forward):
       - fuse the three heads into a single lane-dense (h1, 128k) weight slab
       - cast the matmul operands to bf16 (f32 masters stay with the caller)
    """
    action_size = int(params["wm"].shape[1])
    state_size = int(params["w1"].shape[0])
    head_dim = 2 * action_size + 1
    head_pad = _round_up(head_dim, LANES)

    wh = jnp.concatenate([params["wm"], params["wls"], params["wv"]], axis=1)
    bh = jnp.concatenate([params["bm"], params["bls"], params["bv"]], axis=1)
    wh = jnp.pad(wh, ((0, 0), (0, head_pad - head_dim)))
    bh = jnp.pad(bh, ((0, 0), (0, head_pad - head_dim)))

    return dict(
        w1=params["w1"].astype(jnp.bfloat16), b1=params["b1"],
        w2=params["w2"].astype(jnp.bfloat16), b2=params["b2"],
        wh=wh.astype(jnp.bfloat16), bh=bh,
        state_size=state_size, action_size=action_size,
    )


# ----------------------------------------------------------------------------
# Forward wrapper
# ----------------------------------------------------------------------------
def _choose_tm(batch):
    """Large tiles (per-step fixed cost dominates compute), but keep >=2 grid
    steps when the batch allows it so v7x's two TensorCores both get work."""
    b8 = _round_up(max(batch, 1), 8)
    if b8 <= 8:
        return 8
    return min(TM_MAX, _round_up(pl.cdiv(b8, 2), 8))


def ppo_forward(state, prepped):
    """Returns (value, mean, log_std), matching PPO.forward semantics."""
    state_size = prepped["state_size"]
    action_size = prepped["action_size"]
    head_pad = prepped["wh"].shape[1]
    h0 = prepped["w1"].shape[1]
    h1 = prepped["w2"].shape[1]

    x = jnp.asarray(state, jnp.float32).reshape(-1, state_size)
    B = x.shape[0]

    tm = _choose_tm(B)
    grid = (pl.cdiv(B, tm),)   # ragged last block: masked on the output write

    # Batch-tiled activations / outputs; weights & biases use constant
    # index_maps so they are DMA'd once and stay VMEM-resident.
    in_specs = [
        pl.BlockSpec((tm, state_size), lambda i: (i, 0)),     # x tile
        pl.BlockSpec((state_size, h0), lambda i: (0, 0)),     # w1 (resident)
        pl.BlockSpec((1, h0), lambda i: (0, 0)),              # b1 (resident)
        pl.BlockSpec((h0, h1), lambda i: (0, 0)),             # w2 (resident)
        pl.BlockSpec((1, h1), lambda i: (0, 0)),              # b2 (resident)
        pl.BlockSpec((h1, head_pad), lambda i: (0, 0)),       # fused head W
        pl.BlockSpec((1, head_pad), lambda i: (0, 0)),        # fused head b
    ]
    out_spec = pl.BlockSpec((tm, head_pad), lambda i: (i, 0))

    out = pl.pallas_call(
        ppo_fused_kernel,
        out_shape=jax.ShapeDtypeStruct((B, head_pad), jnp.float32),
        grid_spec=pltpu.PrefetchScalarGridSpec(
            num_scalar_prefetch=0,
            grid=grid,
            in_specs=in_specs,
            out_specs=out_spec,
        ),
        compiler_params=pltpu.CompilerParams(
            dimension_semantics=("parallel",),
        ),
    )(x, prepped["w1"], prepped["b1"], prepped["w2"], prepped["b2"],
      prepped["wh"], prepped["bh"])

    mean = out[:, :action_size]
    log_std = out[:, action_size:2 * action_size]
    value = out[:, 2 * action_size:2 * action_size + 1]
    return value, mean, log_std


# ----------------------------------------------------------------------------
# References for the self-test
# ----------------------------------------------------------------------------
def _reference_forward_bf16(state, params, state_size):
    """Pure-JAX reference using the same bf16-operand / f32-accumulate math."""
    x = jnp.asarray(state, jnp.float32).reshape(-1, state_size).astype(jnp.bfloat16)
    w1 = params["w1"].astype(jnp.bfloat16)
    w2 = params["w2"].astype(jnp.bfloat16)
    wm = params["wm"].astype(jnp.bfloat16)
    wls = params["wls"].astype(jnp.bfloat16)
    wv = params["wv"].astype(jnp.bfloat16)

    h = jnp.dot(x, w1, preferred_element_type=jnp.float32) + params["b1"]
    h = _leaky_relu(h).astype(jnp.bfloat16)
    h = jnp.dot(h, w2, preferred_element_type=jnp.float32) + params["b2"]
    h = _leaky_relu(h).astype(jnp.bfloat16)
    mean = jnp.dot(h, wm, preferred_element_type=jnp.float32) + params["bm"]
    log_std = jnp.dot(h, wls, preferred_element_type=jnp.float32) + params["bls"]
    value = jnp.dot(h, wv, preferred_element_type=jnp.float32) + params["bv"]
    return value, mean, log_std


def _reference_forward_f32(state, params, state_size):
    """True-f32 reference (precision=HIGHEST), matching the PyTorch module."""
    P = jax.lax.Precision.HIGHEST
    x = jnp.asarray(state, jnp.float32).reshape(-1, state_size)
    h = _leaky_relu(jnp.dot(x, params["w1"], precision=P) + params["b1"])
    h = _leaky_relu(jnp.dot(h, params["w2"], precision=P) + params["b2"])
    mean = jnp.dot(h, params["wm"], precision=P) + params["bm"]
    log_std = jnp.dot(h, params["wls"], precision=P) + params["bls"]
    value = jnp.dot(h, params["wv"], precision=P) + params["bv"]
    return value, mean, log_std


# ----------------------------------------------------------------------------
# Self-test
# ----------------------------------------------------------------------------
if __name__ == "__main__":
    state_size = 8
    action_size = 4

    key = jax.random.PRNGKey(0)
    k_params, k_small, k_large = jax.random.split(key, 3)

    params = init_ppo_params(k_params, state_size, action_size)
    prepped = prepare_ppo_params(params)

    for k_state, batch in ((k_small, 2), (k_large, 300)):
        state = jax.random.normal(k_state, (batch, state_size), jnp.float32)

        value, mean, log_std = ppo_forward(state, prepped)
        jax.block_until_ready((value, mean, log_std))

        assert value.shape == (batch, 1)
        assert mean.shape == (batch, action_size)
        assert log_std.shape == (batch, action_size)

        # bf16-consistent reference (same operand precisions as the kernel)
        v_b, m_b, ls_b = _reference_forward_bf16(state, params, state_size)
        np.testing.assert_allclose(np.asarray(value), np.asarray(v_b), rtol=1e-2, atol=1e-2)
        np.testing.assert_allclose(np.asarray(mean), np.asarray(m_b), rtol=1e-2, atol=1e-2)
        np.testing.assert_allclose(np.asarray(log_std), np.asarray(ls_b), rtol=1e-2, atol=1e-2)

        # true f32 reference (quantifies bf16 drift vs. the PyTorch semantics)
        v_f, m_f, ls_f = _reference_forward_f32(state, params, state_size)
        np.testing.assert_allclose(np.asarray(value), np.asarray(v_f), rtol=5e-2, atol=5e-2)
        np.testing.assert_allclose(np.asarray(mean), np.asarray(m_f), rtol=5e-2, atol=5e-2)
        np.testing.assert_allclose(np.asarray(log_std), np.asarray(ls_f), rtol=5e-2, atol=5e-2)

    print("KERNEL_OK")
</pallas_src>

<mosaic_0001>
module attributes {stable_mosaic.version = 11 : i64} {
  func.func @ppo_fused_kernel(%arg0: i32, %arg1: memref<8x8xf32, #tpu.memory_space<vmem>>, %arg2: memref<8x256xbf16, #tpu.memory_space<vmem>>, %arg3: memref<1x256xf32, #tpu.memory_space<vmem>>, %arg4: memref<256x256xbf16, #tpu.memory_space<vmem>>, %arg5: memref<1x256xf32, #tpu.memory_space<vmem>>, %arg6: memref<256x128xbf16, #tpu.memory_space<vmem>>, %arg7: memref<1x128xf32, #tpu.memory_space<vmem>>, %arg8: memref<8x128xf32, #tpu.memory_space<vmem>>) attributes {dimension_semantics = [#tpu.dimension_semantics<parallel>], iteration_bounds = array<i64: 1>, scalar_prefetch = 0 : i64, scratch_operands = 0 : i64, tpu.core_type = #tpu.core_type<tc>, window_params = [{transform_indices = @transform_0, window_bounds = array<i64: 8, 8>}, {pipeline_mode = #tpu.pipeline_mode<synchronous>, transform_indices = @transform_1, window_bounds = array<i64: 8, 256>}, {pipeline_mode = #tpu.pipeline_mode<synchronous>, transform_indices = @transform_2, window_bounds = array<i64: 1, 256>}, {pipeline_mode = #tpu.pipeline_mode<synchronous>, transform_indices = @transform_3, window_bounds = array<i64: 256, 256>}, {pipeline_mode = #tpu.pipeline_mode<synchronous>, transform_indices = @transform_4, window_bounds = array<i64: 1, 256>}, {pipeline_mode = #tpu.pipeline_mode<synchronous>, transform_indices = @transform_5, window_bounds = array<i64: 256, 128>}, {pipeline_mode = #tpu.pipeline_mode<synchronous>, transform_indices = @transform_6, window_bounds = array<i64: 1, 128>}, {transform_indices = @transform_7, window_bounds = array<i64: 8, 128>}]} {
    %c0 = arith.constant 0 : index
    %c0_0 = arith.constant 0 : index
    %0 = vector.load %arg1[%c0, %c0_0] : memref<8x8xf32, #tpu.memory_space<vmem>>, vector<8x8xf32>
    %1 = arith.truncf %0 : vector<8x8xf32> to vector<8x8xbf16>
    %c0_1 = arith.constant 0 : index
    %c0_2 = arith.constant 0 : index
    %2 = vector.load %arg2[%c0_1, %c0_2] : memref<8x256xbf16, #tpu.memory_space<vmem>>, vector<8x256xbf16>
    %cst = arith.constant dense<0.000000e+00> : vector<8x256xf32>
    %3 = tpu.matmul %1, %2, %cst {dimension_numbers = #tpu.dot_dimension_numbers<[1], [0], [0], [1], [0, 0, 1, 1], [], []>} : vector<8x8xbf16>, vector<8x256xbf16>, vector<8x256xf32> -> vector<8x256xf32>
    %c0_3 = arith.constant 0 : index
    %c0_4 = arith.constant 0 : index
    %4 = vector.load %arg3[%c0_3, %c0_4] : memref<1x256xf32, #tpu.memory_space<vmem>>, vector<1x256xf32>
    %5 = vector.broadcast %4 : vector<1x256xf32> to vector<8x256xf32>
    %6 = arith.addf %3, %5 : vector<8x256xf32>
    %cst_5 = arith.constant 0.000000e+00 : f32
    %7 = vector.broadcast %cst_5 : f32 to vector<8x256xf32>
    %8 = arith.cmpf ogt, %6, %7 : vector<8x256xf32>
    %cst_6 = arith.constant 0.00999999977 : f32
    %9 = vector.broadcast %cst_6 : f32 to vector<8x256xf32>
    %10 = arith.mulf %9, %6 : vector<8x256xf32>
    %11 = arith.select %8, %6, %10 : vector<8x256xi1>, vector<8x256xf32>
    %12 = arith.truncf %11 : vector<8x256xf32> to vector<8x256xbf16>
    %c0_7 = arith.constant 0 : index
    %c0_8 = arith.constant 0 : index
    %13 = vector.load %arg4[%c0_7, %c0_8] : memref<256x256xbf16, #tpu.memory_space<vmem>>, vector<256x256xbf16>
    %cst_9 = arith.constant dense<0.000000e+00> : vector<8x256xf32>
    %14 = tpu.matmul %12, %13, %cst_9 {dimension_numbers = #tpu.dot_dimension_numbers<[1], [0], [0], [1], [0, 0, 1, 1], [], []>} : vector<8x256xbf16>, vector<256x256xbf16>, vector<8x256xf32> -> vector<8x256xf32>
    %c0_10 = arith.constant 0 : index
    %c0_11 = arith.constant 0 : index
    %15 = vector.load %arg5[%c0_10, %c0_11] : memref<1x256xf32, #tpu.memory_space<vmem>>, vector<1x256xf32>
    %16 = vector.broadcast %15 : vector<1x256xf32> to vector<8x256xf32>
    %17 = arith.addf %14, %16 : vector<8x256xf32>
    %cst_12 = arith.constant 0.000000e+00 : f32
    %18 = vector.broadcast %cst_12 : f32 to vector<8x256xf32>
    %19 = arith.cmpf ogt, %17, %18 : vector<8x256xf32>
    %cst_13 = arith.constant 0.00999999977 : f32
    %20 = vector.broadcast %cst_13 : f32 to vector<8x256xf32>
    %21 = arith.mulf %20, %17 : vector<8x256xf32>
    %22 = arith.select %19, %17, %21 : vector<8x256xi1>, vector<8x256xf32>
    %23 = arith.truncf %22 : vector<8x256xf32> to vector<8x256xbf16>
    %c0_14 = arith.constant 0 : index
    %c0_15 = arith.constant 0 : index
    %24 = vector.load %arg6[%c0_14, %c0_15] : memref<256x128xbf16, #tpu.memory_space<vmem>>, vector<256x128xbf16>
    %cst_16 = arith.constant dense<0.000000e+00> : vector<8x128xf32>
    %25 = tpu.matmul %23, %24, %cst_16 {dimension_numbers = #tpu.dot_dimension_numbers<[1], [0], [0], [1], [0, 0, 1, 1], [], []>} : vector<8x256xbf16>, vector<256x128xbf16>, vector<8x128xf32> -> vector<8x128xf32>
    %c0_17 = arith.constant 0 : index
    %c0_18 = arith.constant 0 : index
    %26 = vector.load %arg7[%c0_17, %c0_18] : memref<1x128xf32, #tpu.memory_space<vmem>>, vector<1x128xf32>
    %27 = vector.broadcast %26 : vector<1x128xf32> to vector<8x128xf32>
    %28 = arith.addf %25, %27 : vector<8x128xf32>
    %c0_19 = arith.constant 0 : index
    %c0_20 = arith.constant 0 : index
    %29 = vector.load %arg8[%c0_19, %c0_20] : memref<8x128xf32, #tpu.memory_space<vmem>>, vector<8x128xf32>
    tpu.vector_store %arg8[%c0_19, %c0_20], %28 {strides = array<i32>} : memref<8x128xf32, #tpu.memory_space<vmem>>, vector<8x128xf32>,
    return
  }
  func.func @transform_0(%arg0: i32) -> (i32, i32) {
    %c0_i32 = arith.constant 0 : i32
    %c0_i32_0 = arith.constant 0 : i32
    return %arg0, %c0_i32 : i32, i32
  }
  func.func @transform_1(%arg0: i32) -> (i32, i32) {
    %c0_i32 = arith.constant 0 : i32
    %c0_i32_0 = arith.constant 0 : i32
    %c0_i32_1 = arith.constant 0 : i32
    return %c0_i32, %c0_i32_0 : i32, i32
  }
  func.func @transform_2(%arg0: i32) -> (i32, i32) {
    %c0_i32 = arith.constant 0 : i32
    %c0_i32_0 = arith.constant 0 : i32
    %c0_i32_1 = arith.constant 0 : i32
    return %c0_i32, %c0_i32_0 : i32, i32
  }
  func.func @transform_3(%arg0: i32) -> (i32, i32) {
    %c0_i32 = arith.constant 0 : i32
    %c0_i32_0 = arith.constant 0 : i32
    %c0_i32_1 = arith.constant 0 : i32
    return %c0_i32, %c0_i32_0 : i32, i32
  }
  func.func @transform_4(%arg0: i32) -> (i32, i32) {
    %c0_i32 = arith.constant 0 : i32
    %c0_i32_0 = arith.constant 0 : i32
    %c0_i32_1 = arith.constant 0 : i32
    return %c0_i32, %c0_i32_0 : i32, i32
  }
  func.func @transform_5(%arg0: i32) -> (i32, i32) {
    %c0_i32 = arith.constant 0 : i32
    %c0_i32_0 = arith.constant 0 : i32
    %c0_i32_1 = arith.constant 0 : i32
    return %c0_i32, %c0_i32_0 : i32, i32
  }
  func.func @transform_6(%arg0: i32) -> (i32, i32) {
    %c0_i32 = arith.constant 0 : i32
    %c0_i32_0 = arith.constant 0 : i32
    %c0_i32_1 = arith.constant 0 : i32
    return %c0_i32, %c0_i32_0 : i32, i32
  }
  func.func @transform_7(%arg0: i32) -> (i32, i32) {
    %c0_i32 = arith.constant 0 : i32
    %c0_i32_0 = arith.constant 0 : i32
    return %arg0, %c0_i32 : i32, i32
  }
}

</mosaic_0001>

<bundles_post_ra>
// kernel: tpu_custom_call.1
= control target key start
LH: loop header
LB: loop body
LE: loop exit
PB: predicated region body
PF: predicated region fallthrough
CT: control target
= control target key end

     0   :  { %12 = vsyncpa [#allocation3], 0  ;;  %s1015_s0 = inlined_call_operand.hbm [shape: f32[2,8], index: 0, kind: input, shape index: {}]   ;;  %s1016_s1 = inlined_call_operand.hbm [shape: bf16[8,256], index: 1, kind: input, shape index: {}]   ;;  %s1017_s2 = inlined_call_operand.vmem [shape: f32[1,256], index: 2, kind: input, shape index: {}]   ;;  %s1018_s3 = inlined_call_operand.hbm [shape: bf16[256,256], index: 3, kind: input, shape index: {}]   ;;  %s1019_s4 = inlined_call_operand.vmem [shape: f32[1,256], index: 4, kind: input, shape index: {}]   ;;  %s1020_s5 = inlined_call_operand.hbm [shape: bf16[256,128], index: 5, kind: input, shape index: {}]   ;;  %s1021_s6 = inlined_call_operand.vmem [shape: f32[1,128], index: 6, kind: input, shape index: {}]   ;;  %s1022_s7 = inlined_call_operand.hbm [shape: f32[2,128], index: 7, kind: output, shape index: {}]  }
   0x1   :  { %13 = vsyncpa [#allocation6], 0 }
   0x2   :  { %14 = vsyncpa [#allocation9], 0 }
   0x3   :  { %15 = vsyncpa [#allocation4], 0 }
   0x4   :  { %20 = vsyncadd [#allocation3], 96  ;;  %s880_s24 = smov [#allocation5]   ;;  %s881_s26 = smov [#allocation2]  }
   0x5   :  { %s34_s25 = sshll.u32 %s880_s24, 4  ;;  %s21_s27 = sshll.u32 %s881_s26, 4  ;;  %s35_s25 = int_to_ptr.vmem [resolvable:$true] %s34_s25  ;;  %s932_s27 = int_to_ptr.vmem [resolvable:$true] %s21_s27 }
   0x6   :  { %s762_s30 = scalar_lea.hbm %s1016_s1, 128 }
   0x7   :  { %p763_p0 = scmp.ne.s32.totalorder %s1016_s1, %s762_s30  ;;  %p766_p1 = scmp.lt.u32.totalorder %s762_s30, %s1016_s1 }
   0x9   :  { %p768_p2 = pnand %p766_p1, %p763_p0 }
   0xb   :  { %771 = shalt.err (!%p768_p2)
}
   0xc   :  { %s772_s12 = scalar_lea.vmem %s35_s25, 128  ;;  %p777_p4 = scmp.lt.s32.totalorder %s35_s25, %s35_s25 }
   0xd   :  { %p773_p3 = scmp.ne.s32.totalorder %s35_s25, %s772_s12  ;;  %p778_p5 = scmp.lt.s32.totalorder %s772_s12, %s772_s12 }
   0xf   :  { %p779_p6 = por %p778_p5, %p777_p4 }
  0x11   :  { %p780_p7 = pnand %p779_p6, %p773_p3 }
  0x13   :  { %783 = shalt.err (!%p780_p7)
}
  0x14   :  { %37 = dma.hbm_to_vmem [thread:$0]  %s1016_s1, 128, %s35_s25, [#allocation6]  }
  0x15   :  { %s784_s17 = scalar_lea.hbm %s1015_s0, 32 }
  0x16   :  { %p785_p8 = scmp.ne.s32.totalorder %s1015_s0, %s784_s17  ;;  %p788_p9 = scmp.lt.u32.totalorder %s784_s17, %s1015_s0 }
  0x18   :  { %p790_p10 = pnand %p788_p9, %p785_p8 }
  0x1a   :  { %793 = shalt.err (!%p790_p10)
}
  0x1b   :  { %s794_s22 = scalar_lea.vmem %s932_s27, 32  ;;  %s798_s1 = scalar_lea.vmem %s932_s27, 128 }
  0x1c   :  { %p795_p11 = scmp.ne.s32.totalorder %s932_s27, %s794_s22  ;;  %p799_p12 = scmp.lt.s32.totalorder %s932_s27, %s932_s27 }
  0x1d   :  { %p800_p13 = scmp.lt.s32.totalorder %s798_s1, %s794_s22 }
  0x1f   :  { %p801_p0 = por %p800_p13, %p799_p12 }
  0x21   :  { %p802_p1 = pnand %p801_p0, %p795_p11 }
  0x23   :  { %805 = shalt.err (!%p802_p1)
}
  0x24   :  { %s882_s23 = smov 32   ;;  %s883_s24 = smov 2  }
  0x25   :  { %27 = dma.hbm_to_vmem [thread:$0]  %s1015_s0, 32, %s932_s27, [#allocation3], %s882_s23, %s882_s23, %s883_s24  }
  0x26   :  { %s884_s28 = smov [#allocation7]   ;;  %s806_s9 = scalar_lea.hbm %s1018_s3, 4096 }
  0x27   :  { %s45_s29 = sshll.u32 %s884_s28, 4  ;;  %p807_p2 = scmp.ne.s32.totalorder %s1018_s3, %s806_s9  ;;  %s46_s29 = int_to_ptr.vmem [resolvable:$true] %s45_s29 }
  0x28   :  { %p810_p3 = scmp.lt.u32.totalorder %s806_s9, %s1018_s3 }
  0x2a   :  { %p812_p4 = pnand %p810_p3, %p807_p2 }
  0x2c   :  { %815 = shalt.err (!%p812_p4)
}
  0x2d   :  { %s816_s14 = scalar_lea.vmem %s46_s29, 4096  ;;  %p821_p6 = scmp.lt.s32.totalorder %s46_s29, %s46_s29 }
  0x2e   :  { %p817_p5 = scmp.ne.s32.totalorder %s46_s29, %s816_s14  ;;  %p822_p7 = scmp.lt.s32.totalorder %s816_s14, %s816_s14 }
  0x30   :  { %p823_p8 = por %p822_p7, %p821_p6 }
  0x32   :  { %p824_p9 = pnand %p823_p8, %p817_p5 }
  0x34   :  { %827 = shalt.err (!%p824_p9)
}
  0x35   :  { %s885_s0 = smov 128   ;;  %s886_s27 = smov 8  }
  0x36   :  { %51 = dma.hbm_to_vmem [thread:$0]  %s1018_s3, 4096, %s46_s29, [#allocation6], %s885_s0, %s885_s0, %s886_s27  }
  0x37   :  { %s887_s17 = smov [#allocation8]   ;;  %s828_s21 = scalar_lea.hbm %s1020_s5, 2048 }
  0x38   :  { %s59_s18 = sshll.u32 %s887_s17, 4  ;;  %p829_p10 = scmp.ne.s32.totalorder %s1020_s5, %s828_s21  ;;  %s60_s18 = int_to_ptr.vmem [resolvable:$true] %s59_s18 }
  0x39   :  { %p832_p11 = scmp.lt.u32.totalorder %s828_s21, %s1020_s5 }
  0x3b   :  { %p834_p12 = pnand %p832_p11, %p829_p10 }
  0x3d   :  { %837 = shalt.err (!%p834_p12)
}
  0x3e   :  { %s838_s28 = scalar_lea.vmem %s60_s18, 2048  ;;  %p843_p0 = scmp.lt.s32.totalorder %s60_s18, %s60_s18 }
  0x3f   :  { %p839_p13 = scmp.ne.s32.totalorder %s60_s18, %s838_s28  ;;  %p844_p1 = scmp.lt.s32.totalorder %s838_s28, %s838_s28 }
  0x41   :  { %p845_p2 = por %p844_p1, %p843_p0 }
  0x43   :  { %p846_p3 = pnand %p845_p2, %p839_p13 }
  0x45   :  { %849 = shalt.err (!%p846_p3)
}
  0x46   :  { %s888_s3 = smov 64   ;;  %s889_s29 = smov 4  }
  0x47   :  { %65 = dma.hbm_to_vmem [thread:$0]  %s1020_s5, 2048, %s60_s18, [#allocation9], %s888_s3, %s888_s3, %s889_s29  }
  0x48   :  { %872 = dma.done.wait [#allocation3], 128  }
  0x49   :  { %873 = vsyncadd [#allocation3], 4294967168 }
  0x4a   :  { %874 = dma.done.wait [#allocation6], 4224  }
  0x4b   :  { %875 = vsyncadd [#allocation6], 4294963072 }
  0x4c   :  { %876 = dma.done.wait [#allocation9], 2048  }
  0x4d   :  { %877 = vsyncadd [#allocation9], 4294965248  ;;  %v890_v0 = vmov 0   ;;  %v83_v1 = vld [vmem:[#allocation5] sm:$0xff]  ;;  %vm105_vm0 = vcmask 1043456   ;;  %v81_v2 = vld [vmem:[#allocation2] sm:$0xff]  ;;  %v86_v51 = vlaneseq }
  0x4e   :  { %144 = vmatprep.mubr.bf16.mxu0 %v890_v0  ;;  %v610_v3 = vcombine.high %v83_v1, %v83_v1  ;;  %v609_v4 = vcombine.low %v83_v1, %v83_v1  ;;  %v698_v5 = vld [vmem:[#allocation7 + $0x4] ss:$8 sps:$4 sm:$0xff]   ;;  %v700_v6 = vld [vmem:[#allocation7] ss:$8 sps:$4 sm:$0xff]   ;;  %v701_v7 = vld [vmem:[#allocation7 + $0x14] ss:$8 sps:$4 sm:$0xff]   ;;  %v82_v9 = vpack.c.bf16 %v81_v2, %v81_v2 }
  0x4f   :  { %365 = vmatprep.subr.bf16.mxu1 %v698_v5  ;;  %vm101_vm1 = vcmask 64512   ;;  %v703_v10 = vld [vmem:[#allocation7 + $0x10] ss:$8 sps:$4 sm:$0xff]   ;;  %v704_v11 = vld [vmem:[#allocation7 + $0x24] ss:$8 sps:$4 sm:$0xff]   ;;  %v87_v52 = vshrl.u32 %v86_v51, 7 }
  0x50   :  { %611 = vmatprep.subr.msk.bf16.mxu0 %vm105_vm0, %v610_v3  ;;  %v107_v8 = vsel %vm105_vm0, %v609_v4, 0  ;;  %366 = vmatpush1.bf16.msra.mxu1 %v700_v6  ;;  %v706_v12 = vld [vmem:[#allocation7 + $0x20] ss:$8 sps:$4 sm:$0xff]   ;;  %v707_v13 = vld [vmem:[#allocation7 + $0x34] ss:$8 sps:$4 sm:$0xff]  }
  0x51   :  { %113 = vmatpush1.bf16.msra.mxu0 %v107_v8  ;;  %367 = vmatprep.subr.bf16.mxu1 %v701_v7  ;;  %v709_v14 = vld [vmem:[#allocation7 + $0x30] ss:$8 sps:$4 sm:$0xff]   ;;  %v710_v15 = vld [vmem:[#allocation7 + $0x44] ss:$8 sps:$4 sm:$0xff]   ;;  %v712_v16 = vld [vmem:[#allocation7 + $0x40] ss:$8 sps:$4 sm:$0xff]  }
  0x52   :  { %v713_v17 = vld [vmem:[#allocation7 + $0x54] ss:$8 sps:$4 sm:$0xff]   ;;  %v715_v18 = vld [vmem:[#allocation7 + $0x50] ss:$8 sps:$4 sm:$0xff]   ;;  %v716_v19 = vld [vmem:[#allocation7 + $0x64] ss:$8 sps:$4 sm:$0xff]  }
  0x53   :  { %v718_v20 = vld [vmem:[#allocation7 + $0x60] ss:$8 sps:$4 sm:$0xff]   ;;  %v719_v21 = vld [vmem:[#allocation7 + $0x74] ss:$8 sps:$4 sm:$0xff]   ;;  %v721_v22 = vld [vmem:[#allocation7 + $0x70] ss:$8 sps:$4 sm:$0xff]  }
  0x54   :  { %612 = vmatmul.mubr.msk.bf16.vlgmr.msra.gmra.mrb[0].mxu0 %vm101_vm1, %v82_v9  ;;  %368 = vmatpush1.bf16.msra.mxu1 %v703_v10  ;;  %v722_v23 = vld [vmem:[#allocation7 + $0x84] ss:$8 sps:$4 sm:$0xff]   ;;  %v724_v24 = vld [vmem:[#allocation7 + $0x80] ss:$8 sps:$4 sm:$0xff]   ;;  %v725_v25 = vld [vmem:[#allocation7 + $0x94] ss:$8 sps:$4 sm:$0xff]  }
  0x55   :  { %369 = vmatprep.subr.bf16.mxu1 %v704_v11  ;;  %v727_v26 = vld [vmem:[#allocation7 + $0x90] ss:$8 sps:$4 sm:$0xff]   ;;  %v728_v27 = vld [vmem:[#allocation7 + $0xa4] ss:$8 sps:$4 sm:$0xff]   ;;  %v730_v28 = vld [vmem:[#allocation7 + $0xa0] ss:$8 sps:$4 sm:$0xff]  }
  0x56   :  { %v731_v29 = vld [vmem:[#allocation7 + $0xb4] ss:$8 sps:$4 sm:$0xff]   ;;  %v733_v30 = vld [vmem:[#allocation7 + $0xb0] ss:$8 sps:$4 sm:$0xff]   ;;  %v734_v31 = vld [vmem:[#allocation7 + $0xc4] ss:$8 sps:$4 sm:$0xff]  }
  0x57   :  { %v736_v32 = vld [vmem:[#allocation7 + $0xc0] ss:$8 sps:$4 sm:$0xff]   ;;  %v737_v33 = vld [vmem:[#allocation7 + $0xd4] ss:$8 sps:$4 sm:$0xff]   ;;  %v739_v34 = vld [vmem:[#allocation7 + $0xd0] ss:$8 sps:$4 sm:$0xff]  }
  0x58   :  { %370 = vmatpush1.bf16.msra.mxu1 %v706_v12  ;;  %v740_v35 = vld [vmem:[#allocation7 + $0xe4] ss:$8 sps:$4 sm:$0xff]   ;;  %v742_v36 = vld [vmem:[#allocation7 + $0xe0] ss:$8 sps:$4 sm:$0xff]   ;;  %v743_v37 = vld [vmem:[#allocation7 + $0xf4] ss:$8 sps:$4 sm:$0xff]  }
  0x59   :  { %371 = vmatprep.subr.bf16.mxu1 %v707_v13  ;;  %v745_v38 = vld [vmem:[#allocation7 + $0xf0] ss:$8 sps:$4 sm:$0xff]   ;;  %v746_v39 = vld [vmem:[#allocation8 + $0x40] sm:$0xff]   ;;  %v748_v41 = vld [vmem:[#allocation8 + $0x48] sm:$0xff]   ;;  %v88_v53 = vsub.s32 0, %v87_v52  ;;  %v92_v55 = vsub.s32 1, %v87_v52 }
  0x5a   :  { %v747_v40 = vld [vmem:[#allocation8] sm:$0xff]   ;;  %662 = vmatprep.subr.bf16.mxu0 %v746_v39  ;;  %v749_v42 = vld [vmem:[#allocation8 + $0x8] sm:$0xff]   ;;  %v750_v43 = vld [vmem:[#allocation8 + $0x50] sm:$0xff]  }
  0x5b   :  { %663 = vmatpush3.bf16.msra.mxu0 %v747_v40  ;;  %v751_v44 = vld [vmem:[#allocation8 + $0x10] sm:$0xff]   ;;  %v752_v45 = vld [vmem:[#allocation8 + $0x58] sm:$0xff]   ;;  %v754_v47 = vld [vmem:[#allocation8 + $0x60] sm:$0xff]  }
  0x5c   :  { %372 = vmatpush1.bf16.msra.mxu1 %v709_v14  ;;  %664 = vmatprep.subr.bf16.mxu0 %v748_v41  ;;  %v753_v46 = vld [vmem:[#allocation8 + $0x18] sm:$0xff]   ;;  %v755_v48 = vld [vmem:[#allocation8 + $0x20] sm:$0xff]   ;;  %v756_v49 = vld [vmem:[#allocation8 + $0x68] sm:$0xff]  }
  0x5d   :  { %373 = vmatprep.subr.bf16.mxu1 %v710_v15  ;;  %v757_v50 = vld [vmem:[#allocation8 + $0x28] sm:$0xff]   ;;  %v84_v54 = vld [vmem:[%s1017_s2] sm:$0x3]  ;;  %v760_v8 = vld [vmem:[#allocation8 + $0x78] sm:$0xff]  }
  0x5e   :  { %v89_v56 = vrot.slane %v84_v54, %v88_v53  ;;  %v93_v57 = vrot.slane %v84_v54, %v92_v55  ;;  %v758_v6 = vld [vmem:[#allocation8 + $0x70] sm:$0xff]   ;;  %v761_v9 = vld [vmem:[#allocation8 + $0x38] sm:$0xff]  }
  0x5f   :  { %665 = vmatpush3.bf16.msra.mxu0 %v749_v42  ;;  %v759_v7 = vld [vmem:[#allocation8 + $0x30] sm:$0xff]  }
  0x60   :  { %374 = vmatpush1.bf16.msra.mxu1 %v712_v16  ;;  %666 = vmatprep.subr.bf16.mxu0 %v750_v43  ;;  %v193_v10 = vld [vmem:[%s1019_s4] sm:$0x3] }
  0x61   :  { %375 = vmatprep.subr.bf16.mxu1 %v713_v17  ;;  %v198_v11 = vrot.slane %v193_v10, %v88_v53  ;;  %v202_v12 = vrot.slane %v193_v10, %v92_v55 }
  0x63   :  { %667 = vmatpush3.bf16.msra.mxu0 %v751_v44 }
  0x64   :  { %376 = vmatpush1.bf16.msra.mxu1 %v715_v18  ;;  %668 = vmatprep.subr.bf16.mxu0 %v752_v45 }
  0x65   :  { %377 = vmatprep.subr.bf16.mxu1 %v716_v19 }
  0x67   :  { %669 = vmatpush3.bf16.msra.mxu0 %v753_v46 }
  0x68   :  { %378 = vmatpush1.bf16.msra.mxu1 %v718_v20  ;;  %670 = vmatprep.subr.bf16.mxu0 %v754_v47 }
  0x69   :  { %379 = vmatprep.subr.bf16.mxu1 %v719_v21 }
  0x6b   :  { %671 = vmatpush3.bf16.msra.mxu0 %v755_v48 }
  0x6c   :  { %380 = vmatpush1.bf16.msra.mxu1 %v721_v22  ;;  %672 = vmatprep.subr.bf16.mxu0 %v756_v49 }
  0x6d   :  { %381 = vmatprep.subr.bf16.mxu1 %v722_v23 }
  0x6f   :  { %673 = vmatpush3.bf16.msra.mxu0 %v757_v50 }
  0x70   :  { %382 = vmatpush1.bf16.msra.mxu1 %v724_v24  ;;  %674 = vmatprep.subr.bf16.mxu0 %v758_v6 }
  0x71   :  { %383 = vmatprep.subr.bf16.mxu1 %v725_v25 }
  0x73   :  { %675 = vmatpush3.bf16.msra.mxu0 %v759_v7 }
  0x74   :  { %384 = vmatpush1.bf16.msra.mxu1 %v727_v26  ;;  %676 = vmatprep.subr.bf16.mxu0 %v760_v8  ;;  %v645_v26 = vld [vmem:[%s1021_s6] ss:$0 sm:$0xff] }
  0x75   :  { %385 = vmatprep.subr.bf16.mxu1 %v728_v27 }
  0x77   :  { %677 = vmatpush3.bf16.msra.mxu0 %v761_v9 }
  0x78   :  { %386 = vmatpush1.bf16.msra.mxu1 %v730_v28 }
  0x79   :  { %387 = vmatprep.subr.bf16.mxu1 %v731_v29 }
  0x7c   :  { %388 = vmatpush1.bf16.msra.mxu1 %v733_v30 }
  0x7d   :  { %389 = vmatprep.subr.bf16.mxu1 %v734_v31 }
  0x80   :  { %390 = vmatpush1.bf16.msra.mxu1 %v736_v32 }
  0x81   :  { %391 = vmatprep.subr.bf16.mxu1 %v737_v33 }
  0x84   :  { %392 = vmatpush1.bf16.msra.mxu1 %v739_v34 }
  0x85   :  { %393 = vmatprep.subr.bf16.mxu1 %v740_v35 }
  0x88   :  { %394 = vmatpush1.bf16.msra.mxu1 %v742_v36 }
  0x89   :  { %395 = vmatprep.subr.bf16.mxu1 %v743_v37 }
  0x8c   :  { %396 = vmatpush1.bf16.msra.mxu1 %v745_v38 }
 0x127   :  { %v146_v58 = vpop.f32.mrb[0].mxu0 }
 0x128   :  { %v147_v59 = vadd.f32 %v146_v58, %v89_v56  ;;  %v148_v60 = vpop.f32.mrb[1].mxu0 }
 0x129   :  { %v149_v61 = vadd.f32 %v148_v60, %v93_v57  ;;  %v150_v62 = vpop.f32.mrb[2].mxu0 }
 0x12a   :  { %vm153_vm2 = vcmp.gt.f32.partialorder %v147_v59, 0.0  ;;  %v155_v63 = vmul.f32 0.01, %v147_v59  ;;  %v151_v0 = vpop.f32.mrb[3].mxu0 }
 0x12b   :  { %vm154_vm3 = vcmp.gt.f32.partialorder %v149_v61, 0.0  ;;  %v156_v1 = vmul.f32 0.01, %v149_v61 }
 0x12c   :  { %v157_v2 = vsel %vm153_vm2, %v147_v59, %v155_v63 }
 0x12d   :  { %v158_v3 = vsel %vm154_vm3, %v149_v61, %v156_v1  ;;  %v159_v5 = vpack.c.bf16 %v157_v2, %v157_v2 }
 0x12e   :  { %v160_v4 = vpack.c.bf16 %v158_v3, %v158_v3 }
 0x130   :  { %397 = vmatprep.mubr.bf16.mxu1 %v160_v4 }
 0x131   :  { %398 = vmatmul.mubr.bf16.vlgmr.msra.gmra.mrb[0].mxu1 %v159_v5 }
 0x204   :  { %v399_v13 = vpop.f32.mrb[0].mxu1 }
 0x205   :  { %v400_v14 = vadd.f32 %v399_v13, %v198_v11  ;;  %v401_v15 = vpop.f32.mrb[1].mxu1 }
 0x206   :  { %v402_v16 = vadd.f32 %v401_v15, %v202_v12  ;;  %v403_v17 = vpop.f32.mrb[2].mxu1 }
 0x207   :  { %vm406_vm4 = vcmp.gt.f32.partialorder %v400_v14, 0.0  ;;  %v408_v18 = vmul.f32 0.01, %v400_v14  ;;  %v404_v19 = vpop.f32.mrb[3].mxu1 }
 0x208   :  { %vm407_vm5 = vcmp.gt.f32.partialorder %v402_v16, 0.0  ;;  %v409_v20 = vmul.f32 0.01, %v402_v16 }
 0x209   :  { %v410_v21 = vsel %vm406_vm4, %v400_v14, %v408_v18 }
 0x20a   :  { %v411_v22 = vsel %vm407_vm5, %v402_v16, %v409_v20  ;;  %v412_v24 = vpack.c.bf16 %v410_v21, %v410_v21 }
 0x20b   :  { %v413_v23 = vpack.c.bf16 %v411_v22, %v411_v22 }
 0x20d   :  { %581 = vmatprep.mubr.bf16.mxu0 %v413_v23 }
 0x20e   :  { %582 = vmatmul.mubr.bf16.vlgmr.msra.gmra.mrb[4].mxu0 %v412_v24 }
 0x2e1   :  { %v678_v25 = vpop.f32.mrb[4].mxu0 }
 0x2e2   :  { %v679_v27 = vpop.f32.mrb[5].mxu0 }
 0x2e3   :  { %v680_v28 = vadd.f32 %v679_v27, %v678_v25  ;;  %v681_v29 = vpop.f32.mrb[6].mxu0 }
 0x2e4   :  { %v682_v30 = vpop.f32.mrb[7].mxu0 }
 0x2e5   :  { %v584_v31 = vadd.f32 %v680_v28, %v645_v26 }
 0x2e7   :  { %589 = vst [vmem:[#allocation10] sm:$0xff] %v584_v31 }
 0x2e8   :  { %594 = vsyncadd [#allocation4], 96  ;;  %s891_s12 = smov [#allocation10]  }
 0x2e9   :  { %s595_s13 = sshll.u32 %s891_s12, 4  ;;  %s596_s13 = int_to_ptr.vmem [resolvable:$true] %s595_s13 }
 0x2ea   :  { %s850_s14 = scalar_lea.vmem %s596_s13, 32  ;;  %s854_s0 = scalar_lea.vmem %s596_s13, 128 }
 0x2eb   :  { %p851_p4 = scmp.ne.s32.totalorder %s596_s13, %s850_s14  ;;  %p855_p5 = scmp.lt.s32.totalorder %s596_s13, %s596_s13 }
 0x2ec   :  { %p856_p6 = scmp.lt.s32.totalorder %s854_s0, %s850_s14 }
 0x2ee   :  { %p857_p7 = por %p856_p6, %p855_p5 }
 0x2f0   :  { %p858_p8 = pnand %p857_p7, %p851_p4 }
 0x2f2   :  { %861 = shalt.err (!%p858_p8)
}
 0x2f3   :  { %s862_s15 = scalar_lea.hbm %s1022_s7, 32 }
 0x2f4   :  { %p863_p9 = scmp.ne.s32.totalorder %s1022_s7, %s862_s15  ;;  %p866_p10 = scmp.lt.u32.totalorder %s862_s15, %s1022_s7 }
 0x2f6   :  { %p868_p11 = pnand %p866_p10, %p863_p9 }
 0x2f8   :  { %871 = shalt.err (!%p868_p11)
}
 0x2f9   :  { %601 = dma.vmem_to_hbm [thread:$0]  %s596_s13, 32, %s1022_s7, [#allocation4], %s882_s23, %s882_s23, %s883_s24  }
 0x2fa   :  { %878 = dma.done.wait [#allocation4], 128  }
 0x2fb   :  { %879 = vsyncadd [#allocation4], 4294967168 }
 0x2fc   :  { %605 = vsyncpa [#allocation3], 1 }
 0x2fd   :  { %606 = vsyncpa [#allocation6], 1 }
 0x2fe   :  { %607 = vsyncpa [#allocation9], 1 }
 0x2ff   :  { %608 = vsyncpa [#allocation4], 1 }

</bundles_post_ra>
